<compile_context>
chip_gen: v7x
topology: tpu7x:2x2x1
jax: 0.10.0
libtpu: 0.0.40
codegen_flags: <defaults>
</compile_context>

<pallas_src>
import functools

import jax
import jax.numpy as jnp
from jax.experimental import pallas as pl
from jax.experimental.pallas import tpu as pltpu

LANE = 128
SUBLANE = 8


def _focal_kernel(pred_ref, gt_ref,
                  pos_out, neg_out, npos_out,
                  pos_acc, neg_acc, npos_acc,
                  *, n_valid, block_rows, blocks_per_core):
    p = pl.program_id(0)          # core / parallel axis
    i = pl.program_id(1)          # sequential block axis (reduction)

    @pl.when(i == 0)
    def _():
        pos_acc[...] = jnp.zeros_like(pos_acc)
        neg_acc[...] = jnp.zeros_like(neg_acc)
        npos_acc[...] = jnp.zeros_like(npos_acc)

    pred = pred_ref[...].astype(jnp.float32)
    gt = gt_ref[...].astype(jnp.float32)

    # Validity from the *logical* global element index (handles the tail pad,
    # ragged boundary blocks, and clamped duplicate blocks on the idle core).
    blk = p * blocks_per_core + i
    row_ids = jax.lax.broadcasted_iota(jnp.int32, (block_rows, LANE), 0)
    lane_ids = jax.lax.broadcasted_iota(jnp.int32, (block_rows, LANE), 1)
    elem_idx = (blk * block_rows + row_ids) * LANE + lane_ids
    valid = elem_idx < n_valid

    is_pos = jnp.logical_and(valid, gt == 1.0)
    is_neg = jnp.logical_and(valid, gt < 1.0)

    # One log per element: gt==1 and gt<1 are mutually exclusive.
    p_sel = jnp.where(is_pos, pred, 1.0 - pred)
    log_p = jnp.log(p_sel)

    one_m_pred = 1.0 - pred
    pos_term = log_p * one_m_pred * one_m_pred          # log(pred)*(1-pred)^2
    neg_w = (1.0 - gt) * (1.0 - gt)
    neg_w = neg_w * neg_w                                # (1-gt)^4
    neg_term = log_p * pred * pred * neg_w               # log(1-pred)*pred^2*(1-gt)^4

    # where-selection (not multiply) so garbage / -inf never poisons the sums.
    pos_loss = jnp.where(is_pos, pos_term, 0.0)
    neg_loss = jnp.where(is_neg, neg_term, 0.0)
    npos = jnp.where(is_pos, 1.0, 0.0)

    # Fold (block_rows, 128) -> (8, 128) with pure VPU adds (no cross-lane).
    def fold(x):
        return jnp.sum(x.reshape(block_rows // SUBLANE, SUBLANE, LANE), axis=0)

    pos_acc[...] += fold(pos_loss)
    neg_acc[...] += fold(neg_loss)
    npos_acc[...] += fold(npos)

    @pl.when(i == pl.num_programs(1) - 1)
    def _():
        pos_out[...] = pos_acc[...]
        neg_out[...] = neg_acc[...]
        npos_out[...] = npos_acc[...]


def focal_loss(pred, gt, *, block_rows=1024, num_cores=2):
    """CornerNet modified focal loss. pred, gt: (B, C, H, W), pred in (0,1)."""
    assert pred.shape == gt.shape
    n = int(pred.size)

    pred_f = pred.reshape(-1)
    gt_f = gt.reshape(-1)

    # Pad only a tiny tail (and only when needed) so the (rows, 128) view has
    # rows % 8 == 0.  Pad value 0.5 keeps log() finite; the in-kernel index
    # mask excludes it anyway.
    chunk = SUBLANE * LANE
    rem = n % chunk
    if rem:
        pad = chunk - rem
        pred_f = jnp.pad(pred_f, (0, pad), constant_values=0.5)
        gt_f = jnp.pad(gt_f, (0, pad), constant_values=0.5)

    rows = pred_f.shape[0] // LANE
    pred_2d = pred_f.reshape(rows, LANE)
    gt_2d = gt_f.reshape(rows, LANE)

    block_rows = min(block_rows, rows)           # rows and default are mult. of 8
    n_row_blocks = pl.cdiv(rows, block_rows)
    blocks_per_core = pl.cdiv(n_row_blocks, num_cores)
    grid = (num_cores, blocks_per_core)

    def in_map(p, i):
        blk = p * blocks_per_core + i
        # Clamp logical block index so idle trailing blocks re-read the last
        # real block; the in-kernel index mask zeroes their contribution.
        return (jnp.minimum(blk, n_row_blocks - 1), 0)

    in_spec = pl.BlockSpec((block_rows, LANE), in_map)
    out_spec = pl.BlockSpec((SUBLANE, LANE), lambda p, i: (p, 0))

    kernel = functools.partial(
        _focal_kernel,
        n_valid=n,
        block_rows=block_rows,
        blocks_per_core=blocks_per_core,
    )

    out_sds = jax.ShapeDtypeStruct((num_cores * SUBLANE, LANE), jnp.float32)
    pos_p, neg_p, npos_p = pl.pallas_call(
        kernel,
        out_shape=(out_sds, out_sds, out_sds),
        grid=grid,
        in_specs=[in_spec, in_spec],
        out_specs=(out_spec, out_spec, out_spec),
        scratch_shapes=[pltpu.VMEM((SUBLANE, LANE), jnp.float32)] * 3,
        compiler_params=pltpu.CompilerParams(
            dimension_semantics=("parallel", "arbitrary")),
    )(pred_2d, gt_2d)

    # Tiny final reductions + the `if num_pos == 0` branch in plain JAX.
    pos_s = jnp.sum(pos_p)
    neg_s = jnp.sum(neg_p)
    n_pos = jnp.sum(npos_p)
    safe_den = jnp.maximum(n_pos, 1.0)
    loss = jnp.where(n_pos == 0.0, -neg_s, -(pos_s + neg_s) / safe_den)
    return loss


def _focal_loss_ref(pred, gt):
    pred = pred.astype(jnp.float32)
    gt = gt.astype(jnp.float32)
    pos_inds = (gt == 1.0).astype(jnp.float32)
    neg_inds = (gt < 1.0).astype(jnp.float32)
    neg_weights = (1.0 - gt) ** 4
    pos_loss = jnp.log(pred) * (1.0 - pred) ** 2 * pos_inds
    neg_loss = jnp.log(1.0 - pred) * pred ** 2 * neg_weights * neg_inds
    num_pos = pos_inds.sum()
    pos_loss = pos_loss.sum()
    neg_loss = neg_loss.sum()
    return jnp.where(num_pos == 0.0, -neg_loss,
                     -(pos_loss + neg_loss) / jnp.maximum(num_pos, 1.0))


if __name__ == "__main__":
    # FocalLoss has no parameters to initialize.
    key = jax.random.PRNGKey(0)
    k_pred, k_gt, k_pos = jax.random.split(key, 3)

    B, C, H, W = 2, 4, 16, 16  # NCHW like the PyTorch module
    # pred strictly in (0, 1)
    pred = jax.nn.sigmoid(jax.random.normal(k_pred, (B, C, H, W), jnp.float32))
    # gt: gaussian-like heatmap values in [0, 1) with a few exact 1.0 peaks
    gt = jax.random.uniform(k_gt, (B, C, H, W), jnp.float32, 0.0, 0.95)
    peak_mask = jax.random.uniform(k_pos, (B, C, H, W)) > 0.98
    gt = jnp.where(peak_mask, 1.0, gt)

    loss = focal_loss(pred, gt)
    loss = jax.block_until_ready(loss)

    ref = jax.block_until_ready(_focal_loss_ref(pred, gt))
    assert jnp.isfinite(loss), "loss is not finite"
    assert jnp.allclose(loss, ref, rtol=1e-5, atol=1e-5), (loss, ref)

    print("KERNEL_OK")
</pallas_src>

<mosaic_0001>
module attributes {stable_mosaic.version = 11 : i64} {
  func.func @_focal_kernel(%arg0: i32, %arg1: i32, %arg2: memref<16x128xf32, #tpu.memory_space<vmem>>, %arg3: memref<16x128xf32, #tpu.memory_space<vmem>>, %arg4: memref<8x128xf32, #tpu.memory_space<vmem>>, %arg5: memref<8x128xf32, #tpu.memory_space<vmem>>, %arg6: memref<8x128xf32, #tpu.memory_space<vmem>>, %arg7: memref<8x128xf32, #tpu.memory_space<vmem>>, %arg8: memref<8x128xf32, #tpu.memory_space<vmem>>, %arg9: memref<8x128xf32, #tpu.memory_space<vmem>>) attributes {dimension_semantics = [#tpu.dimension_semantics<parallel>, #tpu.dimension_semantics<arbitrary>], iteration_bounds = array<i64: 2, 1>, scalar_prefetch = 0 : i64, scratch_operands = 3 : i64, tpu.core_type = #tpu.core_type<tc>, window_params = [{transform_indices = @transform_0, window_bounds = array<i64: 16, 128>}, {transform_indices = @transform_1, window_bounds = array<i64: 16, 128>}, {transform_indices = @transform_2, window_bounds = array<i64: 8, 128>}, {transform_indices = @transform_3, window_bounds = array<i64: 8, 128>}, {transform_indices = @transform_4, window_bounds = array<i64: 8, 128>}]} {
    %c0_i32 = arith.constant 0 : i32
    %0 = arith.cmpi eq, %arg1, %c0_i32 : i32
    %1 = arith.extui %0 : i1 to i32
    %c0_i32_0 = arith.constant 0 : i32
    %2 = arith.cmpi ne, %1, %c0_i32_0 : i32
    scf.if %2 {
      %cst_30 = arith.constant 0.000000e+00 : f32
      %65 = vector.broadcast %cst_30 : f32 to vector<8x128xf32>
      %c0_31 = arith.constant 0 : index
      %c0_32 = arith.constant 0 : index
      %66 = vector.load %arg7[%c0_31, %c0_32] : memref<8x128xf32, #tpu.memory_space<vmem>>, vector<8x128xf32>
      tpu.vector_store %arg7[%c0_31, %c0_32], %65 {strides = array<i32>} : memref<8x128xf32, #tpu.memory_space<vmem>>, vector<8x128xf32>,
      %cst_33 = arith.constant 0.000000e+00 : f32
      %67 = vector.broadcast %cst_33 : f32 to vector<8x128xf32>
      %c0_34 = arith.constant 0 : index
      %c0_35 = arith.constant 0 : index
      %68 = vector.load %arg8[%c0_34, %c0_35] : memref<8x128xf32, #tpu.memory_space<vmem>>, vector<8x128xf32>
      tpu.vector_store %arg8[%c0_34, %c0_35], %67 {strides = array<i32>} : memref<8x128xf32, #tpu.memory_space<vmem>>, vector<8x128xf32>,
      %cst_36 = arith.constant 0.000000e+00 : f32
      %69 = vector.broadcast %cst_36 : f32 to vector<8x128xf32>
      %c0_37 = arith.constant 0 : index
      %c0_38 = arith.constant 0 : index
      %70 = vector.load %arg9[%c0_37, %c0_38] : memref<8x128xf32, #tpu.memory_space<vmem>>, vector<8x128xf32>
      tpu.vector_store %arg9[%c0_37, %c0_38], %69 {strides = array<i32>} : memref<8x128xf32, #tpu.memory_space<vmem>>, vector<8x128xf32>,
    } else {
    }
    %c0 = arith.constant 0 : index
    %c0_1 = arith.constant 0 : index
    %3 = vector.load %arg2[%c0, %c0_1] : memref<16x128xf32, #tpu.memory_space<vmem>>, vector<16x128xf32>
    %c0_2 = arith.constant 0 : index
    %c0_3 = arith.constant 0 : index
    %4 = vector.load %arg3[%c0_2, %c0_3] : memref<16x128xf32, #tpu.memory_space<vmem>>, vector<16x128xf32>
    %c1_i32 = arith.constant 1 : i32
    %5 = arith.muli %arg0, %c1_i32 : i32
    %6 = arith.addi %5, %arg1 : i32
    %7 = tpu.iota {dimensions = array<i32: 0>} : vector<16x128xi32>
    %8 = tpu.iota {dimensions = array<i32: 1>} : vector<16x128xi32>
    %c16_i32 = arith.constant 16 : i32
    %9 = arith.muli %6, %c16_i32 : i32
    %10 = vector.broadcast %9 : i32 to vector<16x128xi32>
    %11 = arith.addi %10, %7 : vector<16x128xi32>
    %c128_i32 = arith.constant 128 : i32
    %12 = vector.broadcast %c128_i32 : i32 to vector<16x128xi32>
    %13 = arith.muli %11, %12 : vector<16x128xi32>
    %14 = arith.addi %13, %8 : vector<16x128xi32>
    %c2048_i32 = arith.constant 2048 : i32
    %15 = vector.broadcast %c2048_i32 : i32 to vector<16x128xi32>
    %16 = arith.cmpi slt, %14, %15 : vector<16x128xi32>
    %cst = arith.constant 1.000000e+00 : f32
    %17 = vector.broadcast %cst : f32 to vector<16x128xf32>
    %18 = arith.cmpf oeq, %4, %17 : vector<16x128xf32>
    %19 = arith.andi %16, %18 : vector<16x128xi1>
    %cst_4 = arith.constant 1.000000e+00 : f32
    %20 = vector.broadcast %cst_4 : f32 to vector<16x128xf32>
    %21 = arith.cmpf olt, %4, %20 : vector<16x128xf32>
    %22 = arith.andi %16, %21 : vector<16x128xi1>
    %cst_5 = arith.constant 1.000000e+00 : f32
    %23 = vector.broadcast %cst_5 : f32 to vector<16x128xf32>
    %24 = arith.subf %23, %3 : vector<16x128xf32>
    %25 = arith.select %19, %3, %24 : vector<16x128xi1>, vector<16x128xf32>
    %26 = math.log %25 : vector<16x128xf32>
    %cst_6 = arith.constant 1.000000e+00 : f32
    %27 = vector.broadcast %cst_6 : f32 to vector<16x128xf32>
    %28 = arith.subf %27, %3 : vector<16x128xf32>
    %29 = arith.mulf %26, %28 : vector<16x128xf32>
    %30 = arith.mulf %29, %28 : vector<16x128xf32>
    %cst_7 = arith.constant 1.000000e+00 : f32
    %31 = vector.broadcast %cst_7 : f32 to vector<16x128xf32>
    %32 = arith.subf %31, %4 : vector<16x128xf32>
    %cst_8 = arith.constant 1.000000e+00 : f32
    %33 = vector.broadcast %cst_8 : f32 to vector<16x128xf32>
    %34 = arith.subf %33, %4 : vector<16x128xf32>
    %35 = arith.mulf %32, %34 : vector<16x128xf32>
    %36 = arith.mulf %35, %35 : vector<16x128xf32>
    %37 = arith.mulf %26, %3 : vector<16x128xf32>
    %38 = arith.mulf %37, %3 : vector<16x128xf32>
    %39 = arith.mulf %38, %36 : vector<16x128xf32>
    %cst_9 = arith.constant 0.000000e+00 : f32
    %40 = vector.broadcast %cst_9 : f32 to vector<16x128xf32>
    %41 = arith.select %19, %30, %40 : vector<16x128xi1>, vector<16x128xf32>
    %cst_10 = arith.constant 0.000000e+00 : f32
    %42 = vector.broadcast %cst_10 : f32 to vector<16x128xf32>
    %43 = arith.select %22, %39, %42 : vector<16x128xi1>, vector<16x128xf32>
    %cst_11 = arith.constant 1.000000e+00 : f32
    %cst_12 = arith.constant 0.000000e+00 : f32
    %44 = vector.broadcast %cst_11 : f32 to vector<16x128xf32>
    %45 = vector.broadcast %cst_12 : f32 to vector<16x128xf32>
    %46 = arith.select %19, %44, %45 : vector<16x128xi1>, vector<16x128xf32>
    %c0_13 = arith.constant 0 : index
    %c0_14 = arith.constant 0 : index
    %47 = vector.load %arg7[%c0_13, %c0_14] : memref<8x128xf32, #tpu.memory_space<vmem>>, vector<8x128xf32>
    %48 = vector.shape_cast %41 : vector<16x128xf32> to vector<2x8x128xf32>
    %cst_15 = arith.constant dense<0.000000e+00> : vector<8x128xf32>
    %49 = vector.multi_reduction <add>, %48, %cst_15 [0] : vector<2x8x128xf32> to vector<8x128xf32>
    %50 = arith.addf %47, %49 : vector<8x128xf32>
    %c0_16 = arith.constant 0 : index
    %c0_17 = arith.constant 0 : index
    %51 = vector.load %arg7[%c0_16, %c0_17] : memref<8x128xf32, #tpu.memory_space<vmem>>, vector<8x128xf32>
    tpu.vector_store %arg7[%c0_16, %c0_17], %50 {strides = array<i32>} : memref<8x128xf32, #tpu.memory_space<vmem>>, vector<8x128xf32>,
    %c0_18 = arith.constant 0 : index
    %c0_19 = arith.constant 0 : index
    %52 = vector.load %arg8[%c0_18, %c0_19] : memref<8x128xf32, #tpu.memory_space<vmem>>, vector<8x128xf32>
    %53 = vector.shape_cast %43 : vector<16x128xf32> to vector<2x8x128xf32>
    %cst_20 = arith.constant dense<0.000000e+00> : vector<8x128xf32>
    %54 = vector.multi_reduction <add>, %53, %cst_20 [0] : vector<2x8x128xf32> to vector<8x128xf32>
    %55 = arith.addf %52, %54 : vector<8x128xf32>
    %c0_21 = arith.constant 0 : index
    %c0_22 = arith.constant 0 : index
    %56 = vector.load %arg8[%c0_21, %c0_22] : memref<8x128xf32, #tpu.memory_space<vmem>>, vector<8x128xf32>
    tpu.vector_store %arg8[%c0_21, %c0_22], %55 {strides = array<i32>} : memref<8x128xf32, #tpu.memory_space<vmem>>, vector<8x128xf32>,
    %c0_23 = arith.constant 0 : index
    %c0_24 = arith.constant 0 : index
    %57 = vector.load %arg9[%c0_23, %c0_24] : memref<8x128xf32, #tpu.memory_space<vmem>>, vector<8x128xf32>
    %58 = vector.shape_cast %46 : vector<16x128xf32> to vector<2x8x128xf32>
    %cst_25 = arith.constant dense<0.000000e+00> : vector<8x128xf32>
    %59 = vector.multi_reduction <add>, %58, %cst_25 [0] : vector<2x8x128xf32> to vector<8x128xf32>
    %60 = arith.addf %57, %59 : vector<8x128xf32>
    %c0_26 = arith.constant 0 : index
    %c0_27 = arith.constant 0 : index
    %61 = vector.load %arg9[%c0_26, %c0_27] : memref<8x128xf32, #tpu.memory_space<vmem>>, vector<8x128xf32>
    tpu.vector_store %arg9[%c0_26, %c0_27], %60 {strides = array<i32>} : memref<8x128xf32, #tpu.memory_space<vmem>>, vector<8x128xf32>,
    %c0_i32_28 = arith.constant 0 : i32
    %62 = arith.cmpi eq, %arg1, %c0_i32_28 : i32
    %63 = arith.extui %62 : i1 to i32
    %c0_i32_29 = arith.constant 0 : i32
    %64 = arith.cmpi ne, %63, %c0_i32_29 : i32
    scf.if %64 {
      %c0_30 = arith.constant 0 : index
      %c0_31 = arith.constant 0 : index
      %65 = vector.load %arg7[%c0_30, %c0_31] : memref<8x128xf32, #tpu.memory_space<vmem>>, vector<8x128xf32>
      %c0_32 = arith.constant 0 : index
      %c0_33 = arith.constant 0 : index
      %66 = vector.load %arg4[%c0_32, %c0_33] : memref<8x128xf32, #tpu.memory_space<vmem>>, vector<8x128xf32>
      tpu.vector_store %arg4[%c0_32, %c0_33], %65 {strides = array<i32>} : memref<8x128xf32, #tpu.memory_space<vmem>>, vector<8x128xf32>,
      %c0_34 = arith.constant 0 : index
      %c0_35 = arith.constant 0 : index
      %67 = vector.load %arg8[%c0_34, %c0_35] : memref<8x128xf32, #tpu.memory_space<vmem>>, vector<8x128xf32>
      %c0_36 = arith.constant 0 : index
      %c0_37 = arith.constant 0 : index
      %68 = vector.load %arg5[%c0_36, %c0_37] : memref<8x128xf32, #tpu.memory_space<vmem>>, vector<8x128xf32>
      tpu.vector_store %arg5[%c0_36, %c0_37], %67 {strides = array<i32>} : memref<8x128xf32, #tpu.memory_space<vmem>>, vector<8x128xf32>,
      %c0_38 = arith.constant 0 : index
      %c0_39 = arith.constant 0 : index
      %69 = vector.load %arg9[%c0_38, %c0_39] : memref<8x128xf32, #tpu.memory_space<vmem>>, vector<8x128xf32>
      %c0_40 = arith.constant 0 : index
      %c0_41 = arith.constant 0 : index
      %70 = vector.load %arg6[%c0_40, %c0_41] : memref<8x128xf32, #tpu.memory_space<vmem>>, vector<8x128xf32>
      tpu.vector_store %arg6[%c0_40, %c0_41], %69 {strides = array<i32>} : memref<8x128xf32, #tpu.memory_space<vmem>>, vector<8x128xf32>,
    } else {
    }
    return
  }
  func.func @transform_0(%arg0: i32, %arg1: i32) -> (i32, i32) {
    %c1_i32 = arith.constant 1 : i32
    %0 = arith.muli %arg0, %c1_i32 : i32
    %1 = arith.addi %0, %arg1 : i32
    %c0_i32 = arith.constant 0 : i32
    %2 = arith.minsi %1, %c0_i32 : i32
    %c0_i32_0 = arith.constant 0 : i32
    %c0_i32_1 = arith.constant 0 : i32
    return %2, %c0_i32_0 : i32, i32
  }
  func.func @transform_1(%arg0: i32, %arg1: i32) -> (i32, i32) {
    %c1_i32 = arith.constant 1 : i32
    %0 = arith.muli %arg0, %c1_i32 : i32
    %1 = arith.addi %0, %arg1 : i32
    %c0_i32 = arith.constant 0 : i32
    %2 = arith.minsi %1, %c0_i32 : i32
    %c0_i32_0 = arith.constant 0 : i32
    %c0_i32_1 = arith.constant 0 : i32
    return %2, %c0_i32_0 : i32, i32
  }
  func.func @transform_2(%arg0: i32, %arg1: i32) -> (i32, i32) {
    %c0_i32 = arith.constant 0 : i32
    %c0_i32_0 = arith.constant 0 : i32
    return %arg0, %c0_i32 : i32, i32
  }
  func.func @transform_3(%arg0: i32, %arg1: i32) -> (i32, i32) {
    %c0_i32 = arith.constant 0 : i32
    %c0_i32_0 = arith.constant 0 : i32
    return %arg0, %c0_i32 : i32, i32
  }
  func.func @transform_4(%arg0: i32, %arg1: i32) -> (i32, i32) {
    %c0_i32 = arith.constant 0 : i32
    %c0_i32_0 = arith.constant 0 : i32
    return %arg0, %c0_i32 : i32, i32
  }
}

</mosaic_0001>

<bundles_post_ra>
// kernel: tpu_custom_call.1
= control target key start
LH: loop header
LB: loop body
LE: loop exit
PB: predicated region body
PF: predicated region fallthrough
CT: control target
= control target key end

     0   :  { %s1330_s0 = inlined_call_operand.hbm [shape: f32[16,128], index: 0, kind: input, shape index: {}]   ;;  %s1331_s1 = inlined_call_operand.hbm [shape: f32[16,128], index: 1, kind: input, shape index: {}]   ;;  %s1332_s2 = inlined_call_operand.hbm [shape: f32[16,128], index: 2, kind: output, shape index: {0}]   ;;  %s1333_s3 = inlined_call_operand.hbm [shape: f32[16,128], index: 3, kind: output, shape index: {1}]   ;;  %s1334_s4 = inlined_call_operand.hbm [shape: f32[16,128], index: 4, kind: output, shape index: {2}]  }
   0x1   :  { %1340 = sst [smem:[#allocation19_spill]] %s1330_s0 }
   0x2   :  { %1341 = sst [smem:[#allocation20_spill]] %s1331_s1 }
   0x3   :  { %10 = vsyncpa [#allocation6], 0 }
   0x4   :  { %12 = vsyncpa [#allocation6 + $0x1], 0 }
   0x5   :  { %13 = vsyncpa [#allocation9], 0 }
   0x6   :  { %15 = vsyncpa [#allocation9 + $0x1], 0 }
   0x7   :  { %16 = vsyncpa [#allocation7], 0 }
   0x8   :  { %18 = vsyncpa [#allocation7 + $0x1], 0 }
   0x9   :  { %19 = vsyncpa [#allocation12], 0 }
   0xa   :  { %21 = vsyncpa [#allocation12 + $0x1], 0  ;;  %s1007_s15 = smov 0   ;;  %s1009_s16 = smov 0  }
   0xb   :  { %s1011_s17 = smov 0   ;;  %s1013_s18 = smov 0  }
   0xc   :  { %s1015_s19 = smov 0   ;;  %s1017_s20 = smov 0  }
   0xd   :  { %s1019_s21 = smov 0   ;;  %s1021_s22 = smov 0  }
   0xe LB: > { %s1046_s23 = sadd.s32 4294967295, %s972_s22   ;;  %s1337_s24 = sadd.s32 4294967294, %s972_s22   ;;  %s972_s22 = sphi %s1021_s22, %s27_s22   ;;  %s968_s21 = sphi %s1019_s21, %s1371_s21   ;;  %s964_s20 = sphi %s1017_s20, %s1370_s20   ;;  %s960_s19 = sphi %s1015_s19, %s1320_s19   ;;  %s956_s18 = sphi %s1013_s18, %s1369_s18   ;;  %s952_s17 = sphi %s1011_s17, %s1368_s17   ;;  %s948_s16 = sphi %s1009_s16, %s1367_s16   ;;  %s944_s15 = sphi %s1007_s15, %s1366_s15  }
   0xf   : > { %s39_s25 = sadd.s32 1, %s968_s21  ;;  %p941_p1 = scmp.ne.s32.totalorder %s960_s19, 0 }
  0x10   : > { %p41_p0 = scmp.ge.s32.totalorder %s39_s25, 2  ;;  %p60_p2 = scmp.eq.s32.totalorder %s972_s22, 0 }
  0x11   : > { %p65_p3 = scmp.ne.s32.totalorder %s960_s19, %s956_s18  ;;  %p66_p5 = scmp.eq.s32.totalorder %s1046_s23, 0 }
  0x12   : > { %s1373_s25 = smov (%p41_p0, %s39_s25), 0  ;;  %p1055_p4 = por %p941_p1, %p60_p2 }
  0x13   : > { %1342 = sst [smem:[#allocation18_spill]] %s1373_s25  ;;  %p1060_p6 = por %p66_p5, %p65_p3 }
  0x14   : > { %s107_s28 = ssub.s32 %s968_s21, %s1373_s25  ;;  %s110_s29 = sadd.s32 1, %s952_s17 }
  0x15   : > { %s1344_s27 = scalar_select %p1060_p6, 1, 0 }
  0x16   : > { %p108_p7 = scmp.eq.s32.totalorder %s107_s28, 0  ;;  %p120_p8 = scmp.ne.s32.totalorder %s952_s17, %s948_s16 }
  0x17   : > { %p121_p9 = scmp.eq.s32.totalorder %s1046_s23, 1  ;;  %p126_p10 = scmp.ne.s32.totalorder %s948_s16, %s944_s15 }
  0x18   : > { %s1068_s30 = scalar_select %p108_p7, %s952_s17, %s110_s29  }
  0x19   : > { %p127_p11 = scmp.eq.s32.totalorder %s1337_s24, 1  ;;  %p1077_p12 = por %p121_p9, %p120_p8 }
  0x1a   : > { %p664_p1 = scmp.lt.s32.totalorder %s972_s22, 2  ;;  %s974_s7 = smov [#allocation5]  }
  0x1b   : > { %s1345_s5 = scalar_select %p1077_p12, 1, 0 }
  0x1c   : > { %p1082_p0 = por %p127_p11, %p126_p10  ;;  %s213_s8 = sshll.u32 %s974_s7, 4  ;;  %s214_s8 = int_to_ptr.vmem [resolvable:$true] %s213_s8 }
  0x1d   : > { %p1089_p2 = pnand %p664_p1, %p1055_p4  ;;  %s1348_s0 = sld [smem:[#allocation19_spill]] }
  0x1e   : > { %s1346_s6 = scalar_select %p1082_p0, 1, 0 }
  0x1f   : > { %p747_p5 = pneg %p1089_p2 }
  0x23   : > { %s745_s12 = scalar_lea.hbm %s1348_s0, 256 }
  0x24   : > { %p746_p3 = scmp.ne.s32.totalorder %s1348_s0, %s745_s12  ;;  %p752_p8 = scmp.lt.u32.totalorder %s745_s12, %s745_s12 }
  0x25   : > { %p754_p9 = scmp.lt.u32.totalorder %s745_s12, %s1348_s0 }
  0x26   : > { %p748_p7 = pnand %p747_p5, %p746_p3 }
  0x27   : > { %p755_p10 = por %p754_p9, %p752_p8 }
  0x28   : > { %p749_p4 = pneg %p748_p7 }
  0x2a   : > { %p756_p11 = pnand %p755_p10, %p749_p4 }
  0x2c   : > { %759 = shalt.err (!%p756_p11)
}
  0x2d   : > { %s760_s28 = scalar_lea.vmem %s214_s8, 256  ;;  %s767_s29 = scalar_lea.vmem %s214_s8, 512 }
  0x2e   : > { %p761_p1 = scmp.ne.s32.totalorder %s214_s8, %s760_s28  ;;  %p768_p12 = scmp.lt.s32.totalorder %s214_s8, %s214_s8 }
  0x2f   : > { %p769_p6 = scmp.lt.s32.totalorder %s767_s29, %s760_s28 }
  0x30   : > { %p763_p13 = pnand %p761_p1, %p747_p5 }
  0x31   : > { %p770_p3 = por %p769_p6, %p768_p12 }
  0x32   : > { %p764_p0 = pneg %p763_p13 }
  0x34   : > { %p771_p7 = pnand %p770_p3, %p764_p0 }
  0x36   : > { %774 = shalt.err (!%p771_p7)
}
  0x37   : > { %s975_s7 = smov 128   ;;  %s976_s10 = smov 8  }
  0x38   : > { %650 = dma.hbm_to_vmem [thread:$0]  (!%p1089_p2), %s1348_s0, 256, %s214_s8, [#allocation6], %s975_s7, %s975_s7, %s976_s10  }
  0x39   : > { %p620_p13 = scmp.ge.s32.totalorder %s972_s22, 1  ;;  %p245_p4 = scmp.lt.s32.totalorder %s972_s22, 3 }
  0x3a   : > { %s977_s14 = smov [#allocation8]   ;;  %s1350_s1 = sld [smem:[#allocation20_spill]] }
  0x3b   : > { %p1120_p8 = pnand %p620_p13, %p245_p4  ;;  %s237_s18 = sshll.u32 %s977_s14, 4  ;;  %s238_s18 = int_to_ptr.vmem [resolvable:$true] %s237_s18 }
  0x3d   : > { %s1349_s13 = scalar_select %p1120_p8, 1, 0 }
  0x40   : > { %s775_s29 = scalar_lea.hbm %s1350_s1, 256 }
  0x41   : > { %p776_p6 = scmp.ne.s32.totalorder %s1350_s1, %s775_s29  ;;  %p782_p9 = scmp.lt.u32.totalorder %s775_s29, %s775_s29 }
  0x42   : > { %p784_p10 = scmp.lt.u32.totalorder %s775_s29, %s1350_s1 }
  0x43   : > { %p778_p12 = pnand %p776_p6, %p747_p5 }
  0x44   : > { %p785_p11 = por %p784_p10, %p782_p9 }
  0x45   : > { %p779_p0 = pneg %p778_p12 }
  0x47   : > { %p786_p1 = pnand %p785_p11, %p779_p0 }
  0x49   : > { %789 = shalt.err (!%p786_p1)
}
  0x4a   : > { %s790_s12 = scalar_lea.vmem %s238_s18, 256  ;;  %s797_s24 = scalar_lea.vmem %s238_s18, 512 }
  0x4b   : > { %p791_p3 = scmp.ne.s32.totalorder %s238_s18, %s790_s12  ;;  %p798_p4 = scmp.lt.s32.totalorder %s238_s18, %s238_s18 }
  0x4c   : > { %p799_p8 = scmp.lt.s32.totalorder %s797_s24, %s790_s12 }
  0x4d   : > { %p793_p7 = pnand %p791_p3, %p747_p5 }
  0x4e   : > { %p800_p6 = por %p799_p8, %p798_p4 }
  0x4f   : > { %p794_p13 = pneg %p793_p7 }
  0x51   : > { %p801_p12 = pnand %p800_p6, %p794_p13 }
  0x53   : > { %804 = shalt.err (!%p801_p12)
}
  0x54   : > { %653 = dma.hbm_to_vmem [thread:$0]  (!%p1089_p2), %s1350_s1, 256, %s238_s18, [#allocation9], %s975_s7, %s975_s7, %s976_s10  }
  0x55   : > { %p1351_p0 = scmp.ne.s32.totalorder %s1349_s13, 0 }
  0x56   : > { %s251_s26 = sand.u32 (!%p1351_p0), 1, %s960_s19   ;;  %p1352_p5 = scmp.ne.s32.totalorder (!%p1351_p0), %s1344_s27, 0 }
  0x57   : > { %249 = sbr.rel (%p1351_p0) target bundleno = 198 (0xc6), region = 28  ;;  %s621_s28 = sshll.u32 (!%p1351_p0), %s251_s26, 4 }
  0x58   : > { %s252_s29 = scalar_lea.sflag (!%p1351_p0), [#allocation6], %s251_s26  ;;  %s255_s8 = scalar_lea.vmem (!%p1351_p0), [#allocation5], %s621_s28 }
  0x5e   : > { %926 = dma.done.wait (%p1352_p5), %s252_s29, 256  }
  0x5f   : > { %928 = vsyncadd (%p1352_p5), %s252_s29, 4294967040  ;;  %s261_s9 = scalar_lea.sflag [#allocation9], %s251_s26  ;;  %s264_s11 = scalar_lea.vmem [#allocation8], %s621_s28 }
  0x60   : > { %930 = dma.done.wait (%p1352_p5), %s261_s9, 256  }
  0x61   : > { %932 = vsyncadd (%p1352_p5), %s261_s9, 4294967040  ;;  %v324_v0 = vlaneseq  ;;  %s626_s7 = sshll.u32 %s964_s20, 4  ;;  %v319_v8 = vld [vmem:[%s255_s8] sm:$0xff]  ;;  %v320_v9 = vld [vmem:[%s255_s8 + $0x8] sm:$0xff]  ;;  %s287_s10 = sand.u32 1, %s948_s16   ;;  %v978_v20 = vmov 0.0  }
  0x62   : > { %v330_v1 = vstv %s626_s7  ;;  %v321_v10 = vld [vmem:[%s264_s11] sm:$0xff]  ;;  %v322_v11 = vld [vmem:[%s264_s11 + $0x8] sm:$0xff]  ;;  %v347_v14 = vsub.f32 1.0, %v319_v8  ;;  %v348_v16 = vsub.f32 1.0, %v320_v9  ;;  %s1162_s27 = sshll.u32 %s287_s10, 3  ;;  %s630_s14 = sshll.u32 %s964_s20, 7 }
  0x63   : > { %v325_v2 = vshrl.u32 %v324_v0, 7  ;;  %v328_v4 = vand.u32 127, %v324_v0  ;;  %vm339_vm0 = vcmp.eq.f32.partialorder %v321_v10, 1.0  ;;  %vm340_vm2 = vcmp.eq.f32.partialorder %v322_v11, 1.0  ;;  %s303_s13 = scalar_lea.vmem [#allocation13], %s1162_s27  ;;  %s1339_s18 = scalar_lea.vmem [#allocation11], %s1162_s27 }
  0x64   : > { %v359_v25 = vsub.f32 1.0, %v321_v10  ;;  %v360_v26 = vsub.f32 1.0, %v322_v11  ;;  %vm343_vm6 = vcmp.lt.f32.partialorder %v321_v10, 1.0  ;;  %vm344_vm7 = vcmp.lt.f32.partialorder %v322_v11, 1.0  ;;  %s435_s12 = sshll.u32 %s1339_s18, 4  ;;  %s289_s24 = scalar_lea.vmem [#allocation10], %s1162_s27  ;;  %s1204_s12 = int_to_ptr.vmem [resolvable:$true] %s435_s12 }
  0x65   : > { %v326_v3 = vadd.s32 8, %v325_v2  ;;  %v331_v5 = vadd.s32 %v330_v1, %v325_v2  ;;  %s422_s25 = sshll.u32 %s289_s24, 4  ;;  %s448_s26 = sshll.u32 %s303_s13, 4  ;;  %s1208_s25 = int_to_ptr.vmem [resolvable:$true] %s422_s25  ;;  %s1215_s26 = int_to_ptr.vmem [resolvable:$true] %s448_s26 }
  0x66   : > { %v361_v27 = vmul.f32 %v359_v25, %v359_v25  ;;  %v362_v29 = vmul.f32 %v360_v26, %v360_v26  ;;  %s1213_s8 = scalar_lea.hbm %s1332_s2, %s630_s14  ;;  %s1220_s7 = scalar_lea.hbm %s1333_s3, %s630_s14 }
  0x67   : > { %v332_v6 = vadd.s32 %v330_v1, %v326_v3  ;;  %v333_v7 = vmul.u32 128, %v331_v5  ;;  %s1225_s18 = scalar_lea.hbm %s1334_s4, %s630_s14  ;;  %s399_s20 = scalar_lea.sflag [#allocation7], %s287_s10 }
  0x68   : > { %v363_v33 = vmul.f32 %v361_v27, %v361_v27  ;;  %v364_v36 = vmul.f32 %v362_v29, %v362_v29  ;;  %s805_s29 = scalar_lea.vmem %s1208_s25, 128  ;;  %p1359_p8 = scmp.ne.s32.totalorder %s1345_s5, 0 }
  0x69   : > { %v334_v12 = vmul.u32 128, %v332_v6  ;;  %v335_v13 = vadd.s32 %v333_v7, %v328_v4  ;;  %p806_p2 = scmp.ne.s32.totalorder %s1208_s25, %s805_s29  ;;  %s979_s0 = smov [#allocation10]  }
  0x6a   : > { %s809_s1 = sshll.u32 %s979_s0, 4  ;;  %s810_s1 = int_to_ptr.vmem [resolvable:$false] %s809_s1 }
  0x6b   : > { %v336_v15 = vadd.s32 %v334_v12, %v328_v4  ;;  %vm337_vm1 = vcmp.lt.s32.totalorder %v335_v13, 2048  ;;  %p807_p9 = pnand %p806_p2, %p1359_p8  ;;  %p812_p11 = scmp.lt.s32.totalorder %s1208_s25, %s810_s1 }
  0x6c   : > { %vm1165_vm3 = vmand %vm337_vm1, %vm339_vm0 }
  0x6d   : > { %vm338_vm4 = vcmp.lt.s32.totalorder %v336_v15, 2048  ;;  %v349_v18 = vsel %vm1165_vm3, %v319_v8, %v347_v14  ;;  %v375_v21 = vsel %vm1165_vm3, 1.0, %v978_v20  ;;  %vm1186_vm8 = vmand %vm337_vm1, %vm343_vm6  ;;  %p808_p10 = pneg %p807_p9 }
  0x6e   : > { %vm1172_vm5 = vmand %vm338_vm4, %vm340_vm2  ;;  %741 = vlog2.f32 %v349_v18 }
  0x6f   : > { %v350_v22 = vsel %vm1172_vm5, %v320_v9, %v348_v16  ;;  %v376_v23 = vsel %vm1172_vm5, 1.0, %v978_v20  ;;  %vm346_vm9 = vmand %vm338_vm4, %vm344_vm7 }
  0x70   : > { %743 = vlog2.f32 %v350_v22  ;;  %v386_v24 = vadd.f32 %v376_v23, %v375_v21 }
  0x72   : > { %397 = vst [vmem:[%s303_s13] sm:$0xff] %v386_v24 }
  0x78   : > { %v742_v28 = vpop.eup %741 }
  0x79   : > { %v352_v30 = vmul.f32 0.6931472, %v742_v28 }
  0x7a   : > { %v744_v31 = vpop.eup %743 }
  0x7b   : > { %v354_v32 = vmul.f32 0.6931472, %v744_v31  ;;  %v365_v34 = vmul.f32 %v352_v30, %v319_v8  ;;  %v355_v35 = vmul.f32 %v352_v30, %v347_v14 }
  0x7d   : > { %v366_v37 = vmul.f32 %v354_v32, %v320_v9  ;;  %v367_v38 = vmul.f32 %v365_v34, %v319_v8  ;;  %v356_v39 = vmul.f32 %v354_v32, %v348_v16  ;;  %v357_v40 = vmul.f32 %v355_v35, %v347_v14 }
  0x7f   : > { %v368_v42 = vmul.f32 %v366_v37, %v320_v9  ;;  %v369_v43 = vmul.f32 %v367_v38, %v363_v33  ;;  %v358_v44 = vmul.f32 %v356_v39, %v348_v16  ;;  %v371_v45 = vsel %vm1165_vm3, %v357_v40, 0.0 }
  0x81   : > { %v370_v46 = vmul.f32 %v368_v42, %v364_v36  ;;  %v373_v47 = vsel %vm1186_vm8, %v369_v43, 0.0  ;;  %v372_v48 = vsel %vm1172_vm5, %v358_v44, 0.0 }
  0x82   : > { %v378_v49 = vadd.f32 %v372_v48, %v371_v45 }
  0x83   : > { %v374_v50 = vsel %vm346_vm9, %v370_v46, 0.0 }
  0x84   : > { %v382_v51 = vadd.f32 %v374_v50, %v373_v47  ;;  %393 = vst [vmem:[%s289_s24] sm:$0xff] %v378_v49  ;;  %s811_s24 = scalar_lea.vmem %s810_s1, 256 }
  0x85   : > { %p813_p1 = scmp.lt.s32.totalorder %s811_s24, %s805_s29 }
  0x87   : > { %p814_p3 = por %p813_p1, %p812_p11 }
  0x89   : > { %p815_p7 = pnand %p814_p3, %p808_p10 }
  0x8b   : > { %818 = shalt.err (!%p815_p7)
}
  0x8c   : > { %s819_s10 = scalar_lea.hbm %s1213_s8, 128  ;;  %s823_s0 = scalar_lea.hbm %s1332_s2, 256 }
  0x8d   : > { %p820_p13 = scmp.ne.s32.totalorder %s1213_s8, %s819_s10  ;;  %p824_p12 = scmp.lt.u32.totalorder %s1213_s8, %s1332_s2 }
  0x8e   : > { %p825_p0 = scmp.lt.u32.totalorder %s823_s0, %s819_s10  ;;  %p827_p2 = scmp.lt.u32.totalorder %s819_s10, %s1213_s8 }
  0x8f   : > { %p821_p4 = pnand %p820_p13, %p1359_p8 }
  0x90   : > { %p826_p5 = por %p825_p0, %p824_p12 }
  0x91   : > { %p822_p6 = pneg %p821_p4 }
  0x92   : > { %p828_p9 = por %p827_p2, %p826_p5 }
  0x94   : > { %p829_p10 = pnand %p828_p9, %p822_p6 }
  0x96   : > { %832 = shalt.err (!%p829_p10)
}
  0x97   : > { %641 = dma.vmem_to_hbm [thread:$0]  (%p1359_p8), %s1208_s25, 128, %s1213_s8, %s399_s20  }
  0x98   : > { %s1360_s11 = scalar_lea.vmem [#allocation11], %s1162_s27  ;;  %s1361_s13 = sand.u32 1, %s1046_s23  }
  0x99   : > { %395 = vst [vmem:[%s1360_s11] sm:$0xff] %v382_v51  ;;  %s1254_s29 = scalar_lea.sflag [#allocation12], %s1361_s13  ;;  %s833_s24 = scalar_lea.vmem %s1204_s12, 128 }
  0x9a   : > { %p834_p11 = scmp.ne.s32.totalorder %s1204_s12, %s833_s24  ;;  %s980_s10 = smov [#allocation11]  }
  0x9b   : > { %s837_s14 = sshll.u32 %s980_s10, 4  ;;  %s838_s14 = int_to_ptr.vmem [resolvable:$false] %s837_s14 }
  0x9c   : > { %p835_p1 = pnand %p834_p11, %p1359_p8  ;;  %s839_s28 = scalar_lea.vmem %s838_s14, 256 }
  0x9d   : > { %p840_p7 = scmp.lt.s32.totalorder %s1204_s12, %s838_s14  ;;  %p841_p13 = scmp.lt.s32.totalorder %s839_s28, %s833_s24 }
  0x9e   : > { %p836_p3 = pneg %p835_p1 }
  0x9f   : > { %p842_p4 = por %p841_p13, %p840_p7 }
  0xa1   : > { %p843_p6 = pnand %p842_p4, %p836_p3 }
  0xa3   : > { %846 = shalt.err (!%p843_p6)
}
  0xa4   : > { %s847_s23 = scalar_lea.hbm %s1220_s7, 128  ;;  %s851_s8 = scalar_lea.hbm %s1333_s3, 256 }
  0xa5   : > { %p848_p12 = scmp.ne.s32.totalorder %s1220_s7, %s847_s23  ;;  %p852_p2 = scmp.lt.u32.totalorder %s1220_s7, %s1333_s3 }
  0xa6   : > { %p853_p9 = scmp.lt.u32.totalorder %s851_s8, %s847_s23  ;;  %p855_p11 = scmp.lt.u32.totalorder %s847_s23, %s1220_s7 }
  0xa7   : > { %p849_p0 = pnand %p848_p12, %p1359_p8 }
  0xa8   : > { %p854_p10 = por %p853_p9, %p852_p2 }
  0xa9   : > { %p850_p5 = pneg %p849_p0 }
  0xaa   : > { %p856_p1 = por %p855_p11, %p854_p10 }
  0xac   : > { %p857_p3 = pnand %p856_p1, %p850_p5 }
  0xae   : > { %860 = shalt.err (!%p857_p3)
}
  0xaf   : > { %642 = dma.vmem_to_hbm [thread:$0]  (%p1359_p8), %s1204_s12, 128, %s1220_s7, %s1254_s29  }
  0xb0   : > { %s861_s9 = scalar_lea.vmem %s1215_s26, 128  ;;  %s981_s1 = smov [#allocation13]  }
  0xb1   : > { %p862_p7 = scmp.ne.s32.totalorder %s1215_s26, %s861_s9  ;;  %s865_s11 = sshll.u32 %s981_s1, 4  ;;  %s866_s11 = int_to_ptr.vmem [resolvable:$false] %s865_s11 }
  0xb2   : > { %s867_s13 = scalar_lea.vmem %s866_s11, 256  ;;  %p868_p6 = scmp.lt.s32.totalorder %s1215_s26, %s866_s11 }
  0xb3   : > { %p863_p13 = pnand %p862_p7, %p1359_p8  ;;  %p869_p12 = scmp.lt.s32.totalorder %s867_s13, %s861_s9 }
  0xb5   : > { %p864_p4 = pneg %p863_p13  ;;  %p870_p0 = por %p869_p12, %p868_p6 }
  0xb7   : > { %p871_p5 = pnand %p870_p0, %p864_p4 }
  0xb9   : > { %874 = shalt.err (!%p871_p5)
}
  0xba   : > { %s875_s12 = scalar_lea.hbm %s1225_s18, 128  ;;  %s879_s10 = scalar_lea.hbm %s1334_s4, 256 }
  0xbb   : > { %p876_p2 = scmp.ne.s32.totalorder %s1225_s18, %s875_s12  ;;  %p880_p11 = scmp.lt.u32.totalorder %s1225_s18, %s1334_s4 }
  0xbc   : > { %p881_p1 = scmp.lt.u32.totalorder %s879_s10, %s875_s12  ;;  %p883_p7 = scmp.lt.u32.totalorder %s875_s12, %s1225_s18 }
  0xbd   : > { %p877_p9 = pnand %p876_p2, %p1359_p8 }
  0xbe   : > { %p882_p3 = por %p881_p1, %p880_p11 }
  0xbf   : > { %p878_p10 = pneg %p877_p9 }
  0xc0   : > { %p884_p13 = por %p883_p7, %p882_p3 }
  0xc2   : > { %p885_p4 = pnand %p884_p13, %p878_p10 }
  0xc4   : > { %888 = shalt.err (!%p885_p4)
}
  0xc5   : > { %643 = dma.vmem_to_hbm [thread:$0]  (%p1359_p8), %s1215_s26, 128, %s1225_s18, %s1254_s29  }
  0xc6 PF: > { %s460_s23 = sand.u32 1, %s944_s15   ;;  %p1362_p6 = scmp.ne.s32.totalorder %s1346_s6, 0 }
  0xc7   : > { %p1363_p12 = scmp.ge.s32.totalorder %s972_s22, 2  ;;  %s461_s27 = scalar_lea.sflag [#allocation7], %s460_s23 }
  0xc9   : > { %p655_p0 = pnand %p1363_p12, %p1362_p6 }
  0xcb   : > { %934 = dma.done.wait (!%p655_p0), %s461_s27, 128  }
  0xcc   : > { %936 = vsyncadd (!%p655_p0), %s461_s27, 4294967168  ;;  %s1364_s25 = sadd.s32 4294967294, %s972_s22  }
  0xcd   : > { %s469_s8 = sand.u32 1, %s1364_s25  }
  0xce   : > { %s470_s20 = scalar_lea.sflag [#allocation12], %s469_s8 }
  0xcf   : > { %938 = dma.done.wait (!%p655_p0), %s470_s20, 256  }
  0xd0   : > { %940 = vsyncadd (!%p655_p0), %s470_s20, 4294967040  ;;  %s27_s22 = sadd.s32 1, %s972_s22   ;;  %s1365_s5 = sld [smem:[#allocation18_spill]] }
  0xd1   : > { %p24_p8 = scmp.ge.s32.totalorder %s27_s22, 4   ;;  %s1366_s15 = smov %s948_s16 }
  0xd2   : > { %s1367_s16 = smov %s952_s17  ;;  %s1368_s17 = smov %s1068_s30 }
  0xd3   : > { %s1369_s18 = smov %s960_s19  ;;  %s1320_s19 = smov 0  }
  0xd4   : > { %s1370_s20 = smov %s968_s21  ;;  %26 = sbr.rel (!%p24_p8) target bundleno = 14 (0xe), region = 126 }
  0xd6   : > { %s1371_s21 = smov %s1365_s5 }
  0xdb   :  { %484 = vsyncpa [#allocation6], 1 }
  0xdc   :  { %486 = vsyncpa [#allocation6 + $0x1], 1 }
  0xdd   :  { %487 = vsyncpa [#allocation9], 1 }
  0xde   :  { %489 = vsyncpa [#allocation9 + $0x1], 1 }
  0xdf   :  { %490 = vsyncpa [#allocation7], 1 }
  0xe0   :  { %492 = vsyncpa [#allocation7 + $0x1], 1 }
  0xe1   :  { %493 = vsyncpa [#allocation12], 1 }
  0xe2   :  { %495 = vsyncpa [#allocation12 + $0x1], 1 }

</bundles_post_ra>
